<compile_context>
chip_gen: v7x
topology: tpu7x:2x2x1
jax: 0.10.0
libtpu: 0.0.40
codegen_flags: <defaults>
</compile_context>

<pallas_src>
import math

import jax
import jax.numpy as jnp
from jax.experimental import pallas as pl
from jax.experimental.pallas import tpu as pltpu


def _add_kernel(a_ref, b_ref, o_ref):
    # Hot path: elementwise add on the VPU over the whole VMEM tile.
    o_ref[...] = a_ref[...] + b_ref[...]


def _sublane_pack(dtype) -> int:
    # f32 packs 8 rows per vreg sublane group, bf16 16, int8/fp8 32.
    itemsize = jnp.dtype(dtype).itemsize
    return {4: 8, 2: 16, 1: 32}.get(itemsize, 8)


def _choose_2d_shape(total: int, sub: int):
    """Pick (rows, lane): lane % 128 == 0, prefer rows % sub == 0 (no padding)."""
    max_lane = min(total, 8192)
    lanes = [w for w in range(128, max_lane + 1, 128) if total % w == 0]
    if not lanes:
        return None
    aligned = [w for w in lanes if (total // w) % sub == 0]
    if aligned:
        # Prefer a moderate lane width (<= 2048) for row granularity; fall
        # back to the smallest aligned lane otherwise.
        small = [w for w in aligned if w <= 2048]
        lane = max(small) if small else min(aligned)
    else:
        small = [w for w in lanes if w <= 2048]
        lane = max(small) if small else min(lanes)
    return total // lane, lane


def _vmem_capacity_bytes() -> int:
    try:
        return int(pltpu.get_tpu_info().vmem_capacity_bytes)
    except Exception:
        return 64 << 20  # conservative default (v7x per-TC VMEM)


# Below this per-array size, one full-array VMEM block (no grid) is cheapest.
_SMALL_BYTES = 2 << 20


def add_pallas(x48: jax.Array, x43: jax.Array) -> jax.Array:
    assert x48.shape == x43.shape and x48.dtype == x43.dtype
    orig_shape = x48.shape
    dtype = x48.dtype
    itemsize = jnp.dtype(dtype).itemsize
    total = math.prod(orig_shape)
    sub = _sublane_pack(dtype)

    cost = pl.CostEstimate(
        flops=total, transcendentals=0, bytes_accessed=3 * total * itemsize
    )

    # --- wrapper-side layout plumbing: lane-dense, sublane-aligned 2D slab ---
    pad = 0
    shape2d = _choose_2d_shape(total, sub)
    if shape2d is None:
        # No clean factorization: pad flattened length to a multiple of
        # (sub * lane) so the slab is lane-dense and sublane-aligned.
        lane = 512 if total >= 512 else 128
        chunk = sub * lane
        padded = pl.cdiv(total, chunk) * chunk
        pad = padded - total
        rows = padded // lane
    else:
        rows, lane = shape2d

    def to2d(x):
        flat = x.reshape(-1)
        if pad:
            flat = jnp.pad(flat, (0, pad))
        return flat.reshape(rows, lane)

    a2, b2 = to2d(x48), to2d(x43)
    row_bytes = lane * itemsize
    total_bytes = rows * row_bytes

    if total_bytes <= _SMALL_BYTES:
        # Tiny-activation path (this module's (1,256,14,14) case -> (56, 896)):
        # a single full-array VMEM block, no grid, no pipelining bookkeeping.
        # TODO(synk): at ~196 KiB the standalone kernel launch dominates; in a
        # real model let XLA fuse `x48 + x43` into a neighboring op instead.
        spec = pl.BlockSpec(memory_space=pltpu.MemorySpace.VMEM)
        out2 = pl.pallas_call(
            _add_kernel,
            out_shape=jax.ShapeDtypeStruct((rows, lane), dtype),
            in_specs=[spec, spec],
            out_specs=spec,
            cost_estimate=cost,
        )(a2, b2)
    else:
        # Streaming path: byte-sized blocks (~1-4 MiB), generation aware.
        vmem_cap = _vmem_capacity_bytes()
        # 2 inputs + 1 output, double-buffered => ~6x block bytes live.
        target_bytes = max(512 << 10, min(4 << 20, vmem_cap // 24))
        block_rows = max(sub, (target_bytes // row_bytes) // sub * sub)
        num_blocks = pl.cdiv(rows, block_rows)
        if num_blocks > 1 and num_blocks % 2:
            # Prefer an even block count so v7x's two TensorCores split the
            # "parallel" axis evenly (no-op on v5e/v6e).
            nb = num_blocks + 1
            block_rows = max(sub, pl.cdiv(pl.cdiv(rows, nb), sub) * sub)
            num_blocks = pl.cdiv(rows, block_rows)
        block_bytes = block_rows * row_bytes
        vmem_limit = int(min(vmem_cap * 3 // 4, max(32 << 20, 8 * block_bytes)))

        spec = pl.BlockSpec((block_rows, lane), lambda i: (i, 0))
        out2 = pl.pallas_call(
            _add_kernel,
            out_shape=jax.ShapeDtypeStruct((rows, lane), dtype),
            grid=(num_blocks,),
            in_specs=[spec, spec],
            out_specs=spec,
            cost_estimate=cost,
            compiler_params=pltpu.CompilerParams(
                dimension_semantics=("parallel",),
                vmem_limit_bytes=vmem_limit,
            ),
        )(a2, b2)

    out_flat = out2.reshape(-1)
    if pad:
        out_flat = out_flat[:total]
    return out_flat.reshape(orig_shape)


if __name__ == "__main__":
    # Shapes implied by the module's forward: (1, 256, 14, 14), float32.
    key = jax.random.PRNGKey(0)
    k48, k43 = jax.random.split(key)
    shape = (1, 256, 14, 14)
    x48 = jax.random.normal(k48, shape, dtype=jnp.float32)
    x43 = jax.random.normal(k43, shape, dtype=jnp.float32)

    out = add_pallas(x48, x43)
    jax.block_until_ready(out)

    # Correctness check against plain JAX reference (f32 add is exact).
    ref = x48 + x43
    assert out.shape == ref.shape and out.dtype == ref.dtype
    assert jnp.allclose(out, ref), "mismatch vs reference add"

    print("KERNEL_OK")
</pallas_src>

<mosaic_0001>
module attributes {stable_mosaic.version = 11 : i64} {
  func.func @_add_kernel(%arg0: memref<56x896xf32, #tpu.memory_space<vmem>>, %arg1: memref<56x896xf32, #tpu.memory_space<vmem>>, %arg2: memref<56x896xf32, #tpu.memory_space<vmem>>) attributes {dimension_semantics = [], scalar_prefetch = 0 : i64, scratch_operands = 0 : i64, tpu.core_type = #tpu.core_type<tc>} {
    %c0 = arith.constant 0 : index
    %c0_0 = arith.constant 0 : index
    %0 = vector.load %arg0[%c0, %c0_0] : memref<56x896xf32, #tpu.memory_space<vmem>>, vector<56x896xf32>
    %c0_1 = arith.constant 0 : index
    %c0_2 = arith.constant 0 : index
    %1 = vector.load %arg1[%c0_1, %c0_2] : memref<56x896xf32, #tpu.memory_space<vmem>>, vector<56x896xf32>
    %2 = arith.addf %0, %1 : vector<56x896xf32>
    %c0_3 = arith.constant 0 : index
    %c0_4 = arith.constant 0 : index
    %3 = vector.load %arg2[%c0_3, %c0_4] : memref<56x896xf32, #tpu.memory_space<vmem>>, vector<56x896xf32>
    tpu.vector_store %arg2[%c0_3, %c0_4], %2 {strides = array<i32>} : memref<56x896xf32, #tpu.memory_space<vmem>>, vector<56x896xf32>,
    return
  }
}

</mosaic_0001>

<bundles_post_ra>
// kernel: tpu_custom_call.1
= control target key start
LH: loop header
LB: loop body
LE: loop exit
PB: predicated region body
PF: predicated region fallthrough
CT: control target
= control target key end

     0   :  { %7 = vsyncpa [#allocation3], 0  ;;  %s396_s0 = inlined_call_operand.hbm [shape: f32[56,896], index: 0, kind: input, shape index: {}]   ;;  %s397_s1 = inlined_call_operand.hbm [shape: f32[56,896], index: 1, kind: input, shape index: {}]   ;;  %s398_s2 = inlined_call_operand.hbm [shape: f32[56,896], index: 2, kind: output, shape index: {}]  }
   0x1   :  { %8 = vsyncpa [#allocation6], 0 }
   0x2   :  { %9 = vsyncpa [#allocation4], 0  ;;  %s331_s9 = smov [#allocation2]   ;;  %s259_s13 = scalar_lea.hbm %s396_s0, 6272 }
   0x3   :  { %s15_s10 = sshll.u32 %s331_s9, 4  ;;  %p260_p0 = scmp.ne.s32.totalorder %s396_s0, %s259_s13  ;;  %s16_s10 = int_to_ptr.vmem [resolvable:$true] %s15_s10 }
   0x4   :  { %p263_p1 = scmp.lt.u32.totalorder %s259_s13, %s396_s0 }
   0x6   :  { %p265_p2 = pnand %p263_p1, %p260_p0 }
   0x8   :  { %268 = shalt.err (!%p265_p2)
}
   0x9   :  { %s269_s18 = scalar_lea.vmem %s16_s10, 6272  ;;  %p274_p4 = scmp.lt.s32.totalorder %s16_s10, %s16_s10 }
   0xa   :  { %p270_p3 = scmp.ne.s32.totalorder %s16_s10, %s269_s18  ;;  %p275_p5 = scmp.lt.s32.totalorder %s269_s18, %s269_s18 }
   0xc   :  { %p276_p6 = por %p275_p5, %p274_p4 }
   0xe   :  { %p277_p7 = pnand %p276_p6, %p270_p3 }
  0x10   :  { %280 = shalt.err (!%p277_p7)
}
  0x11   :  { %s332_s19 = smov 896   ;;  %s333_s20 = smov 56  }
  0x12   :  { %21 = dma.hbm_to_vmem [thread:$0]  %s396_s0, 6272, %s16_s10, [#allocation3], %s332_s19, %s332_s19, %s333_s20  }
  0x13   :  { %s334_s23 = smov [#allocation5]   ;;  %s281_s27 = scalar_lea.hbm %s397_s1, 6272 }
  0x14   :  { %s27_s24 = sshll.u32 %s334_s23, 4  ;;  %p282_p8 = scmp.ne.s32.totalorder %s397_s1, %s281_s27  ;;  %s28_s24 = int_to_ptr.vmem [resolvable:$true] %s27_s24 }
  0x15   :  { %p285_p9 = scmp.lt.u32.totalorder %s281_s27, %s397_s1 }
  0x17   :  { %p287_p10 = pnand %p285_p9, %p282_p8 }
  0x19   :  { %290 = shalt.err (!%p287_p10)
}
  0x1a   :  { %s291_s4 = scalar_lea.vmem %s28_s24, 6272  ;;  %p296_p12 = scmp.lt.s32.totalorder %s28_s24, %s28_s24 }
  0x1b   :  { %p292_p11 = scmp.ne.s32.totalorder %s28_s24, %s291_s4  ;;  %p297_p13 = scmp.lt.s32.totalorder %s291_s4, %s291_s4 }
  0x1d   :  { %p298_p0 = por %p297_p13, %p296_p12 }
  0x1f   :  { %p299_p1 = pnand %p298_p0, %p292_p11 }
  0x21   :  { %302 = shalt.err (!%p299_p1)
}
  0x22   :  { %33 = dma.hbm_to_vmem [thread:$0]  %s397_s1, 6272, %s28_s24, [#allocation6], %s332_s19, %s332_s19, %s333_s20  }
  0x23   :  { %325 = dma.done.wait [#allocation3], 6272  }
  0x24   :  { %326 = vsyncadd [#allocation3], 4294961024 }
  0x25   :  { %327 = dma.done.wait [#allocation6], 6272  }
  0x26   :  { %328 = vsyncadd [#allocation6], 4294961024  ;;  %v40_v0 = vld [vmem:[#allocation2] sm:$0xff]  ;;  %v89_v1 = vld [vmem:[#allocation5] sm:$0xff]  ;;  %s335_s1 = smov [#allocation7]  }
  0x27   :  { %v41_v2 = vld [vmem:[#allocation2 + $0x8] sm:$0xff]  ;;  %v138_v3 = vadd.f32 %v89_v1, %v40_v0  ;;  %v90_v4 = vld [vmem:[#allocation5 + $0x8] sm:$0xff]  ;;  %v91_v6 = vld [vmem:[#allocation5 + $0x10] sm:$0xff]  ;;  %s241_s6 = sshll.u32 %s335_s1, 4  ;;  %s242_s6 = int_to_ptr.vmem [resolvable:$true] %s241_s6 }
  0x28   :  { %v42_v5 = vld [vmem:[#allocation2 + $0x10] sm:$0xff]  ;;  %v139_v7 = vadd.f32 %v90_v4, %v41_v2  ;;  %v43_v9 = vld [vmem:[#allocation2 + $0x18] sm:$0xff]  ;;  %v92_v10 = vld [vmem:[#allocation5 + $0x18] sm:$0xff]  ;;  %s303_s7 = scalar_lea.vmem %s242_s6, 6272  ;;  %p308_p3 = scmp.lt.s32.totalorder %s242_s6, %s242_s6 }
  0x29   :  { %v140_v8 = vadd.f32 %v91_v6, %v42_v5  ;;  %v44_v11 = vld [vmem:[#allocation2 + $0x20] sm:$0xff]  ;;  %187 = vst [vmem:[#allocation7] sm:$0xff] %v138_v3  ;;  %v141_v12 = vadd.f32 %v92_v10, %v43_v9  ;;  %v93_v13 = vld [vmem:[#allocation5 + $0x20] sm:$0xff]  ;;  %v94_v15 = vld [vmem:[#allocation5 + $0x28] sm:$0xff]  ;;  %p304_p2 = scmp.ne.s32.totalorder %s242_s6, %s303_s7  ;;  %p309_p4 = scmp.lt.s32.totalorder %s303_s7, %s303_s7 }
  0x2a   :  { %v45_v14 = vld [vmem:[#allocation2 + $0x28] sm:$0xff]  ;;  %188 = vst [vmem:[#allocation7 + $0x8] sm:$0xff] %v139_v7  ;;  %v142_v16 = vadd.f32 %v93_v13, %v44_v11  ;;  %v46_v18 = vld [vmem:[#allocation2 + $0x30] sm:$0xff]  ;;  %v95_v19 = vld [vmem:[#allocation5 + $0x30] sm:$0xff] }
  0x2b   :  { %189 = vst [vmem:[#allocation7 + $0x10] sm:$0xff] %v140_v8  ;;  %v143_v17 = vadd.f32 %v94_v15, %v45_v14  ;;  %v47_v20 = vld [vmem:[#allocation2 + $0x38] sm:$0xff]  ;;  %190 = vst [vmem:[#allocation7 + $0x18] sm:$0xff] %v141_v12  ;;  %v144_v21 = vadd.f32 %v95_v19, %v46_v18  ;;  %v96_v22 = vld [vmem:[#allocation5 + $0x38] sm:$0xff]  ;;  %p310_p5 = por %p309_p4, %p308_p3 }
  0x2c   :  { %v48_v23 = vld [vmem:[#allocation2 + $0x40] sm:$0xff]  ;;  %v97_v24 = vld [vmem:[#allocation5 + $0x40] sm:$0xff]  ;;  %191 = vst [vmem:[#allocation7 + $0x20] sm:$0xff] %v142_v16  ;;  %v145_v25 = vadd.f32 %v96_v22, %v47_v20  ;;  %v98_v28 = vld [vmem:[#allocation5 + $0x48] sm:$0xff] }
  0x2d   :  { %192 = vst [vmem:[#allocation7 + $0x28] sm:$0xff] %v143_v17  ;;  %v146_v26 = vadd.f32 %v97_v24, %v48_v23  ;;  %v49_v27 = vld [vmem:[#allocation2 + $0x48] sm:$0xff]  ;;  %v50_v29 = vld [vmem:[#allocation2 + $0x50] sm:$0xff]  ;;  %193 = vst [vmem:[#allocation7 + $0x30] sm:$0xff] %v144_v21  ;;  %p311_p6 = pnand %p310_p5, %p304_p2 }
  0x2e   :  { %v147_v30 = vadd.f32 %v98_v28, %v49_v27  ;;  %v99_v31 = vld [vmem:[#allocation5 + $0x50] sm:$0xff]  ;;  %v100_v33 = vld [vmem:[#allocation5 + $0x58] sm:$0xff]  ;;  %194 = vst [vmem:[#allocation7 + $0x38] sm:$0xff] %v145_v25  ;;  %v101_v37 = vld [vmem:[#allocation5 + $0x60] sm:$0xff] }
  0x2f   :  { %v51_v32 = vld [vmem:[#allocation2 + $0x58] sm:$0xff]  ;;  %195 = vst [vmem:[#allocation7 + $0x40] sm:$0xff] %v146_v26  ;;  %v148_v34 = vadd.f32 %v99_v31, %v50_v29  ;;  %v52_v36 = vld [vmem:[#allocation2 + $0x60] sm:$0xff]  ;;  %v53_v38 = vld [vmem:[#allocation2 + $0x68] sm:$0xff] }
  0x30   :  { %v149_v35 = vadd.f32 %v100_v33, %v51_v32  ;;  %196 = vst [vmem:[#allocation7 + $0x48] sm:$0xff] %v147_v30  ;;  %v150_v39 = vadd.f32 %v101_v37, %v52_v36  ;;  %v102_v40 = vld [vmem:[#allocation5 + $0x68] sm:$0xff]  ;;  %v103_v42 = vld [vmem:[#allocation5 + $0x70] sm:$0xff]  ;;  %v104_v46 = vld [vmem:[#allocation5 + $0x78] sm:$0xff] }
  0x31   :  { %v54_v41 = vld [vmem:[#allocation2 + $0x70] sm:$0xff]  ;;  %197 = vst [vmem:[#allocation7 + $0x50] sm:$0xff] %v148_v34  ;;  %v151_v43 = vadd.f32 %v102_v40, %v53_v38  ;;  %v55_v45 = vld [vmem:[#allocation2 + $0x78] sm:$0xff]  ;;  %v56_v47 = vld [vmem:[#allocation2 + $0x80] sm:$0xff] }
  0x32   :  { %198 = vst [vmem:[#allocation7 + $0x58] sm:$0xff] %v149_v35  ;;  %v152_v44 = vadd.f32 %v103_v42, %v54_v41  ;;  %199 = vst [vmem:[#allocation7 + $0x60] sm:$0xff] %v150_v39  ;;  %v153_v48 = vadd.f32 %v104_v46, %v55_v45  ;;  %v105_v49 = vld [vmem:[#allocation5 + $0x80] sm:$0xff]  ;;  %v106_v51 = vld [vmem:[#allocation5 + $0x88] sm:$0xff] }
  0x33   :  { %v57_v50 = vld [vmem:[#allocation2 + $0x88] sm:$0xff]  ;;  %200 = vst [vmem:[#allocation7 + $0x68] sm:$0xff] %v151_v43  ;;  %v154_v52 = vadd.f32 %v105_v49, %v56_v47  ;;  %v58_v54 = vld [vmem:[#allocation2 + $0x90] sm:$0xff]  ;;  %v107_v55 = vld [vmem:[#allocation5 + $0x90] sm:$0xff] }
  0x34   :  { %201 = vst [vmem:[#allocation7 + $0x70] sm:$0xff] %v152_v44  ;;  %v155_v53 = vadd.f32 %v106_v51, %v57_v50  ;;  %v59_v56 = vld [vmem:[#allocation2 + $0x98] sm:$0xff]  ;;  %202 = vst [vmem:[#allocation7 + $0x78] sm:$0xff] %v153_v48  ;;  %v156_v57 = vadd.f32 %v107_v55, %v58_v54  ;;  %v108_v58 = vld [vmem:[#allocation5 + $0x98] sm:$0xff] }
  0x35   :  { %v60_v59 = vld [vmem:[#allocation2 + $0xa0] sm:$0xff]  ;;  %v109_v60 = vld [vmem:[#allocation5 + $0xa0] sm:$0xff]  ;;  %203 = vst [vmem:[#allocation7 + $0x80] sm:$0xff] %v154_v52  ;;  %v157_v61 = vadd.f32 %v108_v58, %v59_v56  ;;  %v110_v0 = vld [vmem:[#allocation5 + $0xa8] sm:$0xff] }
  0x36   :  { %204 = vst [vmem:[#allocation7 + $0x88] sm:$0xff] %v155_v53  ;;  %v158_v62 = vadd.f32 %v109_v60, %v60_v59  ;;  %v61_v63 = vld [vmem:[#allocation2 + $0xa8] sm:$0xff]  ;;  %v62_v1 = vld [vmem:[#allocation2 + $0xb0] sm:$0xff]  ;;  %205 = vst [vmem:[#allocation7 + $0x90] sm:$0xff] %v156_v57 }
  0x37   :  { %v159_v2 = vadd.f32 %v110_v0, %v61_v63  ;;  %v111_v3 = vld [vmem:[#allocation5 + $0xb0] sm:$0xff]  ;;  %v112_v5 = vld [vmem:[#allocation5 + $0xb8] sm:$0xff]  ;;  %206 = vst [vmem:[#allocation7 + $0x98] sm:$0xff] %v157_v61  ;;  %v113_v9 = vld [vmem:[#allocation5 + $0xc0] sm:$0xff] }
  0x38   :  { %v63_v4 = vld [vmem:[#allocation2 + $0xb8] sm:$0xff]  ;;  %207 = vst [vmem:[#allocation7 + $0xa0] sm:$0xff] %v158_v62  ;;  %v160_v6 = vadd.f32 %v111_v3, %v62_v1  ;;  %v64_v8 = vld [vmem:[#allocation2 + $0xc0] sm:$0xff]  ;;  %v65_v10 = vld [vmem:[#allocation2 + $0xc8] sm:$0xff] }
  0x39   :  { %v161_v7 = vadd.f32 %v112_v5, %v63_v4  ;;  %208 = vst [vmem:[#allocation7 + $0xa8] sm:$0xff] %v159_v2  ;;  %v162_v11 = vadd.f32 %v113_v9, %v64_v8  ;;  %v114_v12 = vld [vmem:[#allocation5 + $0xc8] sm:$0xff]  ;;  %v115_v14 = vld [vmem:[#allocation5 + $0xd0] sm:$0xff]  ;;  %v116_v18 = vld [vmem:[#allocation5 + $0xd8] sm:$0xff] }
  0x3a   :  { %v66_v13 = vld [vmem:[#allocation2 + $0xd0] sm:$0xff]  ;;  %209 = vst [vmem:[#allocation7 + $0xb0] sm:$0xff] %v160_v6  ;;  %v163_v15 = vadd.f32 %v114_v12, %v65_v10  ;;  %v67_v17 = vld [vmem:[#allocation2 + $0xd8] sm:$0xff]  ;;  %v68_v19 = vld [vmem:[#allocation2 + $0xe0] sm:$0xff] }
  0x3b   :  { %210 = vst [vmem:[#allocation7 + $0xb8] sm:$0xff] %v161_v7  ;;  %v164_v16 = vadd.f32 %v115_v14, %v66_v13  ;;  %211 = vst [vmem:[#allocation7 + $0xc0] sm:$0xff] %v162_v11  ;;  %v165_v20 = vadd.f32 %v116_v18, %v67_v17  ;;  %v117_v21 = vld [vmem:[#allocation5 + $0xe0] sm:$0xff]  ;;  %v118_v23 = vld [vmem:[#allocation5 + $0xe8] sm:$0xff] }
  0x3c   :  { %v69_v22 = vld [vmem:[#allocation2 + $0xe8] sm:$0xff]  ;;  %212 = vst [vmem:[#allocation7 + $0xc8] sm:$0xff] %v163_v15  ;;  %v166_v24 = vadd.f32 %v117_v21, %v68_v19  ;;  %v70_v26 = vld [vmem:[#allocation2 + $0xf0] sm:$0xff]  ;;  %v119_v27 = vld [vmem:[#allocation5 + $0xf0] sm:$0xff] }
  0x3d   :  { %213 = vst [vmem:[#allocation7 + $0xd0] sm:$0xff] %v164_v16  ;;  %v167_v25 = vadd.f32 %v118_v23, %v69_v22  ;;  %v71_v28 = vld [vmem:[#allocation2 + $0xf8] sm:$0xff]  ;;  %214 = vst [vmem:[#allocation7 + $0xd8] sm:$0xff] %v165_v20  ;;  %v168_v29 = vadd.f32 %v119_v27, %v70_v26  ;;  %v120_v30 = vld [vmem:[#allocation5 + $0xf8] sm:$0xff] }
  0x3e   :  { %v72_v31 = vld [vmem:[#allocation2 + $0x100] sm:$0xff]  ;;  %v121_v32 = vld [vmem:[#allocation5 + $0x100] sm:$0xff]  ;;  %215 = vst [vmem:[#allocation7 + $0xe0] sm:$0xff] %v166_v24  ;;  %v169_v33 = vadd.f32 %v120_v30, %v71_v28  ;;  %v122_v36 = vld [vmem:[#allocation5 + $0x108] sm:$0xff] }
  0x3f   :  { %216 = vst [vmem:[#allocation7 + $0xe8] sm:$0xff] %v167_v25  ;;  %v170_v34 = vadd.f32 %v121_v32, %v72_v31  ;;  %v73_v35 = vld [vmem:[#allocation2 + $0x108] sm:$0xff]  ;;  %v74_v37 = vld [vmem:[#allocation2 + $0x110] sm:$0xff]  ;;  %217 = vst [vmem:[#allocation7 + $0xf0] sm:$0xff] %v168_v29 }
  0x40   :  { %v171_v38 = vadd.f32 %v122_v36, %v73_v35  ;;  %v123_v39 = vld [vmem:[#allocation5 + $0x110] sm:$0xff]  ;;  %v124_v41 = vld [vmem:[#allocation5 + $0x118] sm:$0xff]  ;;  %218 = vst [vmem:[#allocation7 + $0xf8] sm:$0xff] %v169_v33  ;;  %v125_v45 = vld [vmem:[#allocation5 + $0x120] sm:$0xff] }
  0x41   :  { %v75_v40 = vld [vmem:[#allocation2 + $0x118] sm:$0xff]  ;;  %219 = vst [vmem:[#allocation7 + $0x100] sm:$0xff] %v170_v34  ;;  %v172_v42 = vadd.f32 %v123_v39, %v74_v37  ;;  %v76_v44 = vld [vmem:[#allocation2 + $0x120] sm:$0xff]  ;;  %v77_v46 = vld [vmem:[#allocation2 + $0x128] sm:$0xff] }
  0x42   :  { %v173_v43 = vadd.f32 %v124_v41, %v75_v40  ;;  %220 = vst [vmem:[#allocation7 + $0x108] sm:$0xff] %v171_v38  ;;  %v174_v47 = vadd.f32 %v125_v45, %v76_v44  ;;  %v126_v48 = vld [vmem:[#allocation5 + $0x128] sm:$0xff]  ;;  %v127_v50 = vld [vmem:[#allocation5 + $0x130] sm:$0xff]  ;;  %v128_v54 = vld [vmem:[#allocation5 + $0x138] sm:$0xff] }
  0x43   :  { %v78_v49 = vld [vmem:[#allocation2 + $0x130] sm:$0xff]  ;;  %221 = vst [vmem:[#allocation7 + $0x110] sm:$0xff] %v172_v42  ;;  %v175_v51 = vadd.f32 %v126_v48, %v77_v46  ;;  %v79_v53 = vld [vmem:[#allocation2 + $0x138] sm:$0xff]  ;;  %v80_v55 = vld [vmem:[#allocation2 + $0x140] sm:$0xff] }
  0x44   :  { %222 = vst [vmem:[#allocation7 + $0x118] sm:$0xff] %v173_v43  ;;  %v176_v52 = vadd.f32 %v127_v50, %v78_v49  ;;  %223 = vst [vmem:[#allocation7 + $0x120] sm:$0xff] %v174_v47  ;;  %v177_v56 = vadd.f32 %v128_v54, %v79_v53  ;;  %v129_v57 = vld [vmem:[#allocation5 + $0x140] sm:$0xff]  ;;  %v130_v59 = vld [vmem:[#allocation5 + $0x148] sm:$0xff] }
  0x45   :  { %v81_v58 = vld [vmem:[#allocation2 + $0x148] sm:$0xff]  ;;  %224 = vst [vmem:[#allocation7 + $0x128] sm:$0xff] %v175_v51  ;;  %v178_v60 = vadd.f32 %v129_v57, %v80_v55  ;;  %v82_v62 = vld [vmem:[#allocation2 + $0x150] sm:$0xff]  ;;  %v131_v63 = vld [vmem:[#allocation5 + $0x150] sm:$0xff] }
  0x46   :  { %225 = vst [vmem:[#allocation7 + $0x130] sm:$0xff] %v176_v52  ;;  %v179_v61 = vadd.f32 %v130_v59, %v81_v58  ;;  %v83_v0 = vld [vmem:[#allocation2 + $0x158] sm:$0xff]  ;;  %226 = vst [vmem:[#allocation7 + $0x138] sm:$0xff] %v177_v56  ;;  %v180_v1 = vadd.f32 %v131_v63, %v82_v62  ;;  %v132_v2 = vld [vmem:[#allocation5 + $0x158] sm:$0xff] }
  0x47   :  { %v84_v3 = vld [vmem:[#allocation2 + $0x160] sm:$0xff]  ;;  %v133_v4 = vld [vmem:[#allocation5 + $0x160] sm:$0xff]  ;;  %227 = vst [vmem:[#allocation7 + $0x140] sm:$0xff] %v178_v60  ;;  %v181_v5 = vadd.f32 %v132_v2, %v83_v0  ;;  %v134_v8 = vld [vmem:[#allocation5 + $0x168] sm:$0xff] }
  0x48   :  { %228 = vst [vmem:[#allocation7 + $0x148] sm:$0xff] %v179_v61  ;;  %v182_v6 = vadd.f32 %v133_v4, %v84_v3  ;;  %v85_v7 = vld [vmem:[#allocation2 + $0x168] sm:$0xff]  ;;  %v86_v9 = vld [vmem:[#allocation2 + $0x170] sm:$0xff]  ;;  %229 = vst [vmem:[#allocation7 + $0x150] sm:$0xff] %v180_v1 }
  0x49   :  { %v183_v10 = vadd.f32 %v134_v8, %v85_v7  ;;  %v135_v11 = vld [vmem:[#allocation5 + $0x170] sm:$0xff]  ;;  %v136_v13 = vld [vmem:[#allocation5 + $0x178] sm:$0xff]  ;;  %230 = vst [vmem:[#allocation7 + $0x158] sm:$0xff] %v181_v5  ;;  %v137_v17 = vld [vmem:[#allocation5 + $0x180] sm:$0xff] }
  0x4a   :  { %v87_v12 = vld [vmem:[#allocation2 + $0x178] sm:$0xff]  ;;  %231 = vst [vmem:[#allocation7 + $0x160] sm:$0xff] %v182_v6  ;;  %v184_v14 = vadd.f32 %v135_v11, %v86_v9  ;;  %v88_v16 = vld [vmem:[#allocation2 + $0x180] sm:$0xff] }
  0x4b   :  { %v185_v15 = vadd.f32 %v136_v13, %v87_v12  ;;  %232 = vst [vmem:[#allocation7 + $0x168] sm:$0xff] %v183_v10  ;;  %v186_v18 = vadd.f32 %v137_v17, %v88_v16 }
  0x4c   :  { %233 = vst [vmem:[#allocation7 + $0x170] sm:$0xff] %v184_v14 }
  0x4d   :  { %234 = vst [vmem:[#allocation7 + $0x178] sm:$0xff] %v185_v15  ;;  %235 = vst [vmem:[#allocation7 + $0x180] sm:$0xff] %v186_v18 }
  0x4e   :  { %314 = shalt.err (!%p311_p6)
}
  0x4f   :  { %s315_s10 = scalar_lea.hbm %s398_s2, 6272 }
  0x50   :  { %p316_p7 = scmp.ne.s32.totalorder %s398_s2, %s315_s10  ;;  %p319_p8 = scmp.lt.u32.totalorder %s315_s10, %s398_s2 }
  0x52   :  { %p321_p9 = pnand %p319_p8, %p316_p7 }
  0x54   :  { %324 = shalt.err (!%p321_p9)
}
  0x55   :  { %247 = dma.vmem_to_hbm [thread:$0]  %s242_s6, 6272, %s398_s2, [#allocation4], %s332_s19, %s332_s19, %s333_s20  }
  0x56   :  { %329 = dma.done.wait [#allocation4], 6272  }
  0x57   :  { %330 = vsyncadd [#allocation4], 4294961024 }
  0x58   :  { %251 = vsyncpa [#allocation3], 1 }
  0x59   :  { %252 = vsyncpa [#allocation6], 1 }
  0x5a   :  { %253 = vsyncpa [#allocation4], 1 }

</bundles_post_ra>
